<compile_context>
chip_gen: v5e
topology: v5e:2x2
jax: 0.10.0
libtpu: 0.0.40
codegen_flags: <defaults>
</compile_context>

<pallas_src>
import functools
import math

import jax
import jax.numpy as jnp
import numpy as np
from jax.experimental import pallas as pl
from jax.experimental.pallas import tpu as pltpu

_LN_EPS = 1e-5
_VMEM_LIMIT = 32 * 1024 * 1024


# ---------------------------------------------------------------------------
# helpers
# ---------------------------------------------------------------------------
def _row_tile(rows, max_rows=512):
    """Largest row tile that divides `rows`, multiple of 8, capped at max_rows."""
    if rows <= max_rows:
        return rows
    t = max_rows - (max_rows % 8)
    while t >= 8:
        if rows % t == 0:
            return t
        t -= 8
    return rows


def _sigmoid(x):
    return 1.0 / (1.0 + jnp.exp(-x))


def _compiler_params(semantics):
    return pltpu.CompilerParams(dimension_semantics=semantics,
                                vmem_limit_bytes=_VMEM_LIMIT)


# ---------------------------------------------------------------------------
# LayerNorm kernels (single-pass centered stats, fused affine)
# ---------------------------------------------------------------------------
def _ln_core(x, g, b, eps):
    mu = jnp.mean(x, axis=-1, keepdims=True)
    xc = x - mu
    var = jnp.mean(xc * xc, axis=-1, keepdims=True)
    inv = jax.lax.rsqrt(var + eps)
    return xc * (inv * g) + b


def _ln_kernel(x_ref, g_ref, b_ref, o_ref, *, eps):
    x = x_ref[...].astype(jnp.float32)
    o_ref[...] = _ln_core(x, g_ref[...], b_ref[...], eps).astype(o_ref.dtype)


def _add_ln_kernel(x_ref, r_ref, g_ref, b_ref, o_ref, *, eps):
    x = x_ref[...].astype(jnp.float32) + r_ref[...].astype(jnp.float32)
    o_ref[...] = _ln_core(x, g_ref[...], b_ref[...], eps).astype(o_ref.dtype)


def _layernorm(x2d, gamma, beta, residual=None, eps=_LN_EPS):
    rows, d = x2d.shape
    tile = _row_tile(rows)
    grid = (rows // tile,)
    g2 = gamma.reshape(1, d).astype(jnp.float32)
    b2 = beta.reshape(1, d).astype(jnp.float32)

    in_specs = [pl.BlockSpec((tile, d), lambda i: (i, 0))]
    args = [x2d]
    if residual is not None:
        in_specs.append(pl.BlockSpec((tile, d), lambda i: (i, 0)))
        args.append(residual)
        kernel = functools.partial(_add_ln_kernel, eps=eps)
    else:
        kernel = functools.partial(_ln_kernel, eps=eps)
    in_specs += [pl.BlockSpec((1, d), lambda i: (0, 0)),
                 pl.BlockSpec((1, d), lambda i: (0, 0))]
    args += [g2, b2]

    return pl.pallas_call(
        kernel,
        out_shape=jax.ShapeDtypeStruct((rows, d), jnp.float32),
        grid_spec=pltpu.PrefetchScalarGridSpec(
            num_scalar_prefetch=0, grid=grid,
            in_specs=in_specs,
            out_specs=pl.BlockSpec((tile, d), lambda i: (i, 0))),
        compiler_params=_compiler_params(("parallel",)),
    )(*args)


# ---------------------------------------------------------------------------
# Linear (+ optional fused log-softmax) kernels
# ---------------------------------------------------------------------------
def _linear_kernel(x_ref, w_ref, b_ref, o_ref):
    acc = jnp.dot(x_ref[...], w_ref[...], preferred_element_type=jnp.float32)
    o_ref[...] = (acc + b_ref[...]).astype(o_ref.dtype)


def _linear_logsoftmax_kernel(x_ref, w_ref, b_ref, o_ref):
    logits = jnp.dot(x_ref[...], w_ref[...],
                     preferred_element_type=jnp.float32) + b_ref[...]
    m = jnp.max(logits, axis=-1, keepdims=True)
    shifted = logits - m
    lse = jnp.log(jnp.sum(jnp.exp(shifted), axis=-1, keepdims=True))
    o_ref[...] = (shifted - lse).astype(o_ref.dtype)


def _call_linear(kernel, x2d, w_t, bias):
    rows, din = x2d.shape
    dout = w_t.shape[1]
    tile = _row_tile(rows)
    grid = (rows // tile,)
    b2 = bias.reshape(1, dout).astype(jnp.float32)
    return pl.pallas_call(
        kernel,
        out_shape=jax.ShapeDtypeStruct((rows, dout), jnp.float32),
        grid_spec=pltpu.PrefetchScalarGridSpec(
            num_scalar_prefetch=0, grid=grid,
            in_specs=[
                pl.BlockSpec((tile, din), lambda i: (i, 0)),
                pl.BlockSpec((din, dout), lambda i: (0, 0)),
                pl.BlockSpec((1, dout), lambda i: (0, 0)),
            ],
            out_specs=pl.BlockSpec((tile, dout), lambda i: (i, 0))),
        compiler_params=_compiler_params(("parallel",)),
    )(x2d, w_t, b2)


def _linear(x2d, w_t, bias):
    return _call_linear(_linear_kernel, x2d, w_t, bias)


def _linear_logsoftmax(x2d, w_t, bias):
    return _call_linear(_linear_logsoftmax_kernel, x2d, w_t, bias)


# ---------------------------------------------------------------------------
# GRU recurrence kernel (grid over time, hidden state in VMEM scratch)
# ---------------------------------------------------------------------------
def _gru_step_kernel(gx_ref, whh_ref, bhh_ref, y_ref, h_ref, *, hidden):
    @pl.when(pl.program_id(0) == 0)
    def _():
        h_ref[...] = jnp.zeros_like(h_ref)

    h = h_ref[...]                                     # (B, H)
    gx = gx_ref[0].astype(jnp.float32)                 # (B, 3H), precomputed x@W_ih^T + b_ih
    gh = jnp.dot(h, whh_ref[...],
                 preferred_element_type=jnp.float32) + bhh_ref[...]

    r = _sigmoid(gx[:, :hidden] + gh[:, :hidden])
    z = _sigmoid(gx[:, hidden:2 * hidden] + gh[:, hidden:2 * hidden])
    n = jnp.tanh(gx[:, 2 * hidden:] + r * gh[:, 2 * hidden:])
    h_new = (1.0 - z) * n + z * h

    h_ref[...] = h_new
    y_ref[0] = h_new.astype(y_ref.dtype)


def _gru(gx_tm, w_hh_t, b_hh, *, hidden):
    """gx_tm: (T, B, 3H) time-major precomputed input gates. Returns (T, B, H)."""
    t, b, three_h = gx_tm.shape
    bhh2 = b_hh.reshape(1, three_h).astype(jnp.float32)
    kernel = functools.partial(_gru_step_kernel, hidden=hidden)
    return pl.pallas_call(
        kernel,
        out_shape=jax.ShapeDtypeStruct((t, b, hidden), jnp.float32),
        grid_spec=pltpu.PrefetchScalarGridSpec(
            num_scalar_prefetch=0, grid=(t,),
            in_specs=[
                pl.BlockSpec((1, b, three_h), lambda i: (i, 0, 0)),
                pl.BlockSpec((hidden, three_h), lambda i: (0, 0)),
                pl.BlockSpec((1, three_h), lambda i: (0, 0)),
            ],
            out_specs=pl.BlockSpec((1, b, hidden), lambda i: (i, 0, 0)),
            scratch_shapes=[pltpu.VMEM((b, hidden), jnp.float32)]),
        compiler_params=_compiler_params(("arbitrary",)),
    )(gx_tm, w_hh_t, bhh2)


# ---------------------------------------------------------------------------
# TimeReduction (pad to multiple of factor, mean over consecutive frames)
# ---------------------------------------------------------------------------
def _time_reduce_tm(x_tm, factor):
    # layout glue on a tiny tensor; zero-padded frames participate in the mean,
    # matching torch's reshape + mean(dim=-2).
    t, b, h = x_tm.shape
    pad = (-t) % factor
    if pad:
        x_tm = jnp.pad(x_tm, ((0, pad), (0, 0), (0, 0)))
    return x_tm.reshape(-1, factor, b, h).mean(axis=1)


# ---------------------------------------------------------------------------
# Full CTCEncoder forward
# ---------------------------------------------------------------------------
def ctc_encoder_forward(xs, params, *, hidden, num_layers,
                        time_reductions=(1,), reduction_factor=2):
    b, t, d_in = xs.shape

    # Encoder-level LayerNorm(input_size)
    h2d = _layernorm(xs.reshape(b * t, d_in), params["norm_w"], params["norm_b"])
    x_tm = jnp.transpose(h2d.reshape(b, t, d_in), (1, 0, 2))   # (T, B, D) time-major

    for i in range(num_layers):
        p = params["layers"][i]
        tcur, bcur, din = x_tm.shape
        w_ih_t = jnp.transpose(p["w_ih"]).astype(jnp.float32)   # (Din, 3H)
        w_hh_t = jnp.transpose(p["w_hh"]).astype(jnp.float32)   # (H, 3H)

        # input-to-gate projection for ALL timesteps in one MXU matmul
        gx = _linear(x_tm.reshape(tcur * bcur, din), w_ih_t, p["b_ih"])
        gx = gx.reshape(tcur, bcur, 3 * hidden)

        ys = _gru(gx, w_hh_t, p["b_hh"], hidden=hidden)          # (T, B, H)

        if i == 0:
            x2d = _layernorm(ys.reshape(tcur * bcur, hidden), p["ln_w"], p["ln_b"])
        else:
            x2d = _layernorm(ys.reshape(tcur * bcur, hidden), p["ln_w"], p["ln_b"],
                             residual=x_tm.reshape(tcur * bcur, hidden))
        x_tm = x2d.reshape(tcur, bcur, hidden)

        if i in time_reductions:
            x_tm = _time_reduce_tm(x_tm, reduction_factor)

    tf, bf, _ = x_tm.shape
    proj = _linear(x_tm.reshape(tf * bf, hidden),
                   jnp.transpose(params["proj_w"]).astype(jnp.float32),
                   params["proj_b"])
    logp = _linear_logsoftmax(proj,
                              jnp.transpose(params["voc_w"]).astype(jnp.float32),
                              params["voc_b"])
    vocab = params["voc_w"].shape[0]
    return jnp.transpose(logp.reshape(tf, bf, vocab), (1, 0, 2))  # (B, T_out, V)


# ---------------------------------------------------------------------------
# Pure-JAX reference (mirrors the PyTorch module)
# ---------------------------------------------------------------------------
def _reference(xs, params, *, hidden, num_layers, time_reductions, reduction_factor):
    hp = jax.lax.Precision.HIGHEST

    def ln(x, w, b, eps=_LN_EPS):
        mu = x.mean(-1, keepdims=True)
        var = jnp.mean((x - mu) ** 2, -1, keepdims=True)
        return (x - mu) * jax.lax.rsqrt(var + eps) * w + b

    x = ln(xs, params["norm_w"], params["norm_b"])
    b = x.shape[0]
    for i in range(num_layers):
        p = params["layers"][i]

        def step(h, x_t, p=p):
            gx = jnp.dot(x_t, p["w_ih"].T, precision=hp) + p["b_ih"]
            gh = jnp.dot(h, p["w_hh"].T, precision=hp) + p["b_hh"]
            r = jax.nn.sigmoid(gx[:, :hidden] + gh[:, :hidden])
            z = jax.nn.sigmoid(gx[:, hidden:2 * hidden] + gh[:, hidden:2 * hidden])
            n = jnp.tanh(gx[:, 2 * hidden:] + r * gh[:, 2 * hidden:])
            h_new = (1.0 - z) * n + z * h
            return h_new, h_new

        h0 = jnp.zeros((b, hidden), jnp.float32)
        _, ys = jax.lax.scan(step, h0, jnp.transpose(x, (1, 0, 2)))
        ys = jnp.transpose(ys, (1, 0, 2))
        x = ys if i == 0 else x + ys
        x = ln(x, p["ln_w"], p["ln_b"])
        if i in time_reductions:
            tcur = x.shape[1]
            pad = (-tcur) % reduction_factor
            if pad:
                x = jnp.pad(x, ((0, 0), (0, pad), (0, 0)))
            x = x.reshape(b, -1, reduction_factor, hidden).mean(axis=2)

    x = jnp.dot(x, params["proj_w"].T, precision=hp) + params["proj_b"]
    logits = jnp.dot(x, params["voc_w"].T, precision=hp) + params["voc_b"]
    return jax.nn.log_softmax(logits, axis=-1)


# ---------------------------------------------------------------------------
# deterministic parameter init (torch-layout weights)
# ---------------------------------------------------------------------------
def _init_params(key, *, input_size, hidden, num_layers, proj_size, vocab):
    keys = iter(jax.random.split(key, 6 * num_layers + 8))

    def nrm(shape, scale):
        return scale * jax.random.normal(next(keys), shape, jnp.float32)

    params = {
        "norm_w": 1.0 + nrm((input_size,), 0.1),
        "norm_b": nrm((input_size,), 0.1),
        "proj_w": nrm((proj_size, hidden), 1.0 / math.sqrt(hidden)),
        "proj_b": nrm((proj_size,), 0.1),
        "voc_w": nrm((vocab, proj_size), 1.0 / math.sqrt(proj_size)),
        "voc_b": nrm((vocab,), 0.1),
        "layers": [],
    }
    din = input_size
    for _ in range(num_layers):
        params["layers"].append({
            "w_ih": nrm((3 * hidden, din), 1.0 / math.sqrt(din)),
            "w_hh": nrm((3 * hidden, hidden), 1.0 / math.sqrt(hidden)),
            "b_ih": nrm((3 * hidden,), 0.1),
            "b_hh": nrm((3 * hidden,), 0.1),
            "ln_w": 1.0 + nrm((hidden,), 0.1),
            "ln_b": nrm((hidden,), 0.1),
        })
        din = hidden
    return params


if __name__ == "__main__":
    B, T = 2, 8
    INPUT, HIDDEN, LAYERS = 16, 32, 2
    PROJ, VOCAB = 16, 8
    TIME_RED = (1,)
    FACTOR = 2

    key = jax.random.PRNGKey(0)
    kx, kp = jax.random.split(key)
    xs = jax.random.normal(kx, (B, T, INPUT), jnp.float32)
    params = _init_params(kp, input_size=INPUT, hidden=HIDDEN,
                          num_layers=LAYERS, proj_size=PROJ, vocab=VOCAB)

    out = ctc_encoder_forward(xs, params, hidden=HIDDEN, num_layers=LAYERS,
                              time_reductions=TIME_RED, reduction_factor=FACTOR)
    out = jax.block_until_ready(out)

    expected = _reference(xs, params, hidden=HIDDEN, num_layers=LAYERS,
                          time_reductions=TIME_RED, reduction_factor=FACTOR)

    t_out = -(-T // FACTOR)
    assert out.shape == (B, t_out, VOCAB), out.shape
    np.testing.assert_allclose(np.asarray(out), np.asarray(expected),
                               rtol=2e-3, atol=2e-3)
    print("KERNEL_OK")
</pallas_src>

<mosaic_0001>
module attributes {stable_mosaic.version = 11 : i64} {
  func.func @_ln_kernel(%arg0: i32, %arg1: memref<16x16xf32, #tpu.memory_space<vmem>>, %arg2: memref<1x16xf32, #tpu.memory_space<vmem>>, %arg3: memref<1x16xf32, #tpu.memory_space<vmem>>, %arg4: memref<16x16xf32, #tpu.memory_space<vmem>>) attributes {dimension_semantics = [#tpu.dimension_semantics<parallel>], iteration_bounds = array<i64: 1>, scalar_prefetch = 0 : i64, scratch_operands = 0 : i64, tpu.core_type = #tpu.core_type<tc>, window_params = [{transform_indices = @transform_0, window_bounds = array<i64: 16, 16>}, {pipeline_mode = #tpu.pipeline_mode<synchronous>, transform_indices = @transform_1, window_bounds = array<i64: 1, 16>}, {pipeline_mode = #tpu.pipeline_mode<synchronous>, transform_indices = @transform_2, window_bounds = array<i64: 1, 16>}, {transform_indices = @transform_3, window_bounds = array<i64: 16, 16>}]} {
    %c0 = arith.constant 0 : index
    %c0_0 = arith.constant 0 : index
    %0 = vector.load %arg1[%c0, %c0_0] : memref<16x16xf32, #tpu.memory_space<vmem>>, vector<16x16xf32>
    %c0_1 = arith.constant 0 : index
    %c0_2 = arith.constant 0 : index
    %1 = vector.load %arg2[%c0_1, %c0_2] : memref<1x16xf32, #tpu.memory_space<vmem>>, vector<1x16xf32>
    %c0_3 = arith.constant 0 : index
    %c0_4 = arith.constant 0 : index
    %2 = vector.load %arg3[%c0_3, %c0_4] : memref<1x16xf32, #tpu.memory_space<vmem>>, vector<1x16xf32>
    %cst = arith.constant dense<0.000000e+00> : vector<16xf32>
    %3 = vector.multi_reduction <add>, %0, %cst [1] : vector<16x16xf32> to vector<16xf32>
    %4 = vector.shape_cast %3 : vector<16xf32> to vector<16x1xf32>
    %cst_5 = arith.constant 1.600000e+01 : f32
    %5 = vector.broadcast %cst_5 : f32 to vector<16x1xf32>
    %6 = arith.divf %4, %5 : vector<16x1xf32>
    %7 = vector.broadcast %6 : vector<16x1xf32> to vector<16x16xf32>
    %8 = arith.subf %0, %7 : vector<16x16xf32>
    %9 = arith.mulf %8, %8 : vector<16x16xf32>
    %cst_6 = arith.constant dense<0.000000e+00> : vector<16xf32>
    %10 = vector.multi_reduction <add>, %9, %cst_6 [1] : vector<16x16xf32> to vector<16xf32>
    %11 = vector.shape_cast %10 : vector<16xf32> to vector<16x1xf32>
    %cst_7 = arith.constant 1.600000e+01 : f32
    %12 = vector.broadcast %cst_7 : f32 to vector<16x1xf32>
    %13 = arith.divf %11, %12 : vector<16x1xf32>
    %cst_8 = arith.constant 9.99999974E-6 : f32
    %14 = vector.broadcast %cst_8 : f32 to vector<16x1xf32>
    %15 = arith.addf %13, %14 : vector<16x1xf32>
    %16 = math.rsqrt %15 : vector<16x1xf32>
    %17 = vector.broadcast %16 : vector<16x1xf32> to vector<16x16xf32>
    %18 = vector.broadcast %1 : vector<1x16xf32> to vector<16x16xf32>
    %19 = arith.mulf %17, %18 : vector<16x16xf32>
    %20 = arith.mulf %8, %19 : vector<16x16xf32>
    %21 = vector.broadcast %2 : vector<1x16xf32> to vector<16x16xf32>
    %22 = arith.addf %20, %21 : vector<16x16xf32>
    %c0_9 = arith.constant 0 : index
    %c0_10 = arith.constant 0 : index
    %23 = vector.load %arg4[%c0_9, %c0_10] : memref<16x16xf32, #tpu.memory_space<vmem>>, vector<16x16xf32>
    tpu.vector_store %arg4[%c0_9, %c0_10], %22 {strides = array<i32>} : memref<16x16xf32, #tpu.memory_space<vmem>>, vector<16x16xf32>,
    return
  }
  func.func @transform_0(%arg0: i32) -> (i32, i32) {
    %c0_i32 = arith.constant 0 : i32
    %c0_i32_0 = arith.constant 0 : i32
    return %arg0, %c0_i32 : i32, i32
  }
  func.func @transform_1(%arg0: i32) -> (i32, i32) {
    %c0_i32 = arith.constant 0 : i32
    %c0_i32_0 = arith.constant 0 : i32
    %c0_i32_1 = arith.constant 0 : i32
    return %c0_i32, %c0_i32_0 : i32, i32
  }
  func.func @transform_2(%arg0: i32) -> (i32, i32) {
    %c0_i32 = arith.constant 0 : i32
    %c0_i32_0 = arith.constant 0 : i32
    %c0_i32_1 = arith.constant 0 : i32
    return %c0_i32, %c0_i32_0 : i32, i32
  }
  func.func @transform_3(%arg0: i32) -> (i32, i32) {
    %c0_i32 = arith.constant 0 : i32
    %c0_i32_0 = arith.constant 0 : i32
    return %arg0, %c0_i32 : i32, i32
  }
}

</mosaic_0001>

<bundles_post_ra>
// kernel: tpu_custom_call.1
= control target key start
LH: loop header
LB: loop body
LE: loop exit
PB: predicated region body
PF: predicated region fallthrough
CT: control target
= control target key end

     0   :  { %8 = vsyncpa [#allocation3], 0  ;;  %s275_s0 = inlined_call_operand.hbm [shape: f32[16,16], index: 0, kind: input, shape index: {}]   ;;  %s276_s1 = inlined_call_operand.hbm [shape: f32[1,16], index: 1, kind: input, shape index: {}]   ;;  %s277_s2 = inlined_call_operand.vmem [shape: f32[1,16], index: 2, kind: input, shape index: {}]   ;;  %s278_s3 = inlined_call_operand.hbm [shape: f32[16,16], index: 3, kind: output, shape index: {}]  }
   0x1   :  { %9 = vsyncpa [#allocation6], 0 }
   0x2   :  { %10 = vsyncpa [#allocation4], 0  ;;  %s15_s14 = sshll.u32 %s275_s0, 4  ;;  %s225_s15 = smov [#allocation2]   ;;  %s16_s14 = int_to_ptr.hbm [resolvable:$true] %s15_s14 }
   0x3   :  { %s17_s16 = sshll.u32 %s225_s15, 4  ;;  %s29_s19 = sshll.u32 %s276_s1, 4  ;;  %s18_s16 = int_to_ptr.vmem [resolvable:$true] %s17_s16  ;;  %s30_s19 = int_to_ptr.hbm [resolvable:$true] %s29_s19 }
   0x4   :  { %s226_s20 = smov 128   ;;  %s227_s21 = smov 8  }
   0x5   :  { %23 = dma.hbm_to_vmem [thread:$0]  %s16_s14, 256, %s18_s16, [#allocation3], %s226_s20, %s226_s20, %s227_s21  }
   0x6   :  { %s228_s22 = smov [#allocation5]  }
   0x7   :  { %s31_s23 = sshll.u32 %s228_s22, 4  ;;  %s32_s23 = int_to_ptr.vmem [resolvable:$true] %s31_s23 }
   0x8   :  { %34 = dma.hbm_to_vmem [thread:$0]  %s30_s19, 16, %s32_s23, [#allocation6]  }
   0x9   :  { %219 = dma.done.wait [#allocation3], 256  }
   0xa   :  { %220 = vsyncadd [#allocation3], 4294967040 }
   0xb   :  { %221 = dma.done.wait [#allocation6], 16  }
   0xc   :  { %222 = vsyncadd [#allocation6], 4294967280  ;;  %vm49_vm0 = vcmask 130048   ;;  %v45_v0 = vld [vmem:[#allocation2] sm:$0xff]  ;;  %v46_v2 = vld [vmem:[#allocation2 + $0x8] sm:$0xff]  ;;  %v229_v4 = vmov 16.0  }
   0xd   :  { %v50_v1 = vsel %vm49_vm0, %v45_v0, 0.0  ;;  %v53_v3 = vsel %vm49_vm0, %v46_v2, 0.0  ;;  %141 = vrcp.f32 %v229_v4  ;;  %v139_v33 = vld [vmem:[#allocation5] ss:$0 sm:$0xff]  ;;  %v140_v39 = vld [vmem:[%s277_s2] ss:$0 sm:$0xff] }
   0xe   :  { %51 = vadd.xlane.f32.xlu0 %v50_v1  ;;  %s230_s24 = smov [#allocation7]   ;;  %s119_s28 = sshll.u32 %s278_s3, 4  ;;  %s120_s28 = int_to_ptr.hbm [resolvable:$true] %s119_s28 }
   0xf   :  { %s117_s25 = sshll.u32 %s230_s24, 4  ;;  %s118_s25 = int_to_ptr.vmem [resolvable:$true] %s117_s25 }
  0x13   :  { %v142_v5 = vpop.eup %141 }
  0x14   :  { %v57_v6 = vmul.f32 16.0, %v142_v5  ;;  %vm61_vm1 = vweird.f32 %v142_v5 }
  0x16   :  { %54 = vadd.xlane.f32.xlu0 %v53_v3  ;;  %v58_v7 = vsub.f32 1.0, %v57_v6 }
  0x18   :  { %v59_v8 = vmul.f32 %v142_v5, %v58_v7 }
  0x1a   :  { %v60_v9 = vadd.f32 %v142_v5, %v59_v8 }
  0x1c   :  { %v62_v10 = vsel %vm61_vm1, %v142_v5, %v60_v9 }
  0x81   :  { %v52_v11 = vpop.xlane.xlu0 %51 }
  0x82   :  { %v63_v12 = vmul.f32 %v62_v10, %v52_v11 }
  0x84   :  { %v65_v13 = vsub.f32 %v45_v0, %v63_v12 }
  0x86   :  { %v67_v14 = vmul.f32 %v65_v13, %v65_v13 }
  0x88   :  { %v69_v15 = vsel %vm49_vm0, %v67_v14, 0.0 }
  0x89   :  { %70 = vadd.xlane.f32.xlu1 %v69_v15  ;;  %v55_v16 = vpop.xlane.xlu0 %54 }
  0x8a   :  { %v64_v17 = vmul.f32 %v62_v10, %v55_v16 }
  0x8c   :  { %v66_v18 = vsub.f32 %v46_v2, %v64_v17 }
  0x8e   :  { %v68_v19 = vmul.f32 %v66_v18, %v66_v18 }
  0x90   :  { %v72_v20 = vsel %vm49_vm0, %v68_v19, 0.0 }
  0x91   :  { %73 = vadd.xlane.f32.xlu1 %v72_v20 }
  0xfc   :  { %v71_v21 = vpop.xlane.xlu1 %70 }
  0xfd   :  { %v75_v22 = vmul.f32 %v71_v21, %v62_v10 }
  0xff   :  { %v77_v23 = vadd.f32 1e-05, %v75_v22 }
 0x101   :  { %143 = vrsqrt.f32 %v77_v23  ;;  %vm85_vm3 = vweird.f32 %v77_v23 }
 0x104   :  { %v74_v24 = vpop.xlane.xlu1 %73 }
 0x105   :  { %v76_v25 = vmul.f32 %v74_v24, %v62_v10 }
 0x107   :  { %v144_v26 = vpop.eup %143  ;;  %v78_v27 = vadd.f32 1e-05, %v76_v25 }
 0x108   :  { %v80_v28 = vmul.f32 %v144_v26, %v77_v23  ;;  %vm86_vm2 = vweird.f32 %v144_v26 }
 0x109   :  { %145 = vrsqrt.f32 %v78_v27  ;;  %vm87_vm4 = vmor %vm85_vm3, %vm86_vm2  ;;  %vm95_vm6 = vweird.f32 %v78_v27 }
 0x10a   :  { %v81_v29 = vmul.f32 %v144_v26, %v80_v28 }
 0x10c   :  { %v82_v30 = vmul.f32 0.5, %v81_v29 }
 0x10e   :  { %v83_v31 = vsub.f32 1.5, %v82_v30 }
 0x10f   :  { %v146_v32 = vpop.eup %145 }
 0x110   :  { %v84_v34 = vmul.f32 %v144_v26, %v83_v31  ;;  %v90_v35 = vmul.f32 %v146_v32, %v78_v27  ;;  %vm96_vm5 = vweird.f32 %v146_v32 }
 0x111   :  { %vm97_vm7 = vmor %vm95_vm6, %vm96_vm5 }
 0x112   :  { %v88_v36 = vsel %vm87_vm4, %v144_v26, %v84_v34  ;;  %v91_v37 = vmul.f32 %v146_v32, %v90_v35 }
 0x113   :  { %v102_v38 = vmul.f32 %v139_v33, %v88_v36 }
 0x114   :  { %v92_v40 = vmul.f32 0.5, %v91_v37 }
 0x115   :  { %v104_v41 = vmul.f32 %v102_v38, %v65_v13 }
 0x116   :  { %v93_v42 = vsub.f32 1.5, %v92_v40 }
 0x117   :  { %v109_v43 = vadd.f32 %v140_v39, %v104_v41 }
 0x118   :  { %v94_v44 = vmul.f32 %v146_v32, %v93_v42 }
 0x119   :  { %111 = vst.msk [vmem:[#allocation7] sm:$0xff] %vm49_vm0, %v109_v43 }
 0x11a   :  { %v98_v45 = vsel %vm97_vm7, %v146_v32, %v94_v44 }
 0x11b   :  { %v103_v46 = vmul.f32 %v139_v33, %v98_v45 }
 0x11d   :  { %v105_v47 = vmul.f32 %v103_v46, %v66_v18 }
 0x11f   :  { %v110_v48 = vadd.f32 %v140_v39, %v105_v47 }
 0x121   :  { %112 = vst.msk [vmem:[#allocation7 + $0x8] sm:$0xff] %vm49_vm0, %v110_v48 }
 0x122   :  { %125 = dma.vmem_to_hbm [thread:$0]  %s118_s25, 256, %s120_s28, [#allocation4], %s226_s20, %s226_s20, %s227_s21  }
 0x123   :  { %223 = dma.done.wait [#allocation4], 256  }
 0x124   :  { %224 = vsyncadd [#allocation4], 4294967040 }
 0x125   :  { %130 = vsyncpa [#allocation3], 1 }
 0x126   :  { %131 = vsyncpa [#allocation6], 1 }
 0x127   :  { %132 = vsyncpa [#allocation4], 1 }

</bundles_post_ra>
